<compile_context>
chip_gen: v7x
topology: tpu7x:2x2x1
jax: 0.10.0
libtpu: 0.0.40
codegen_flags: <defaults>
</compile_context>

<pallas_src>
import jax
import jax.numpy as jnp
from jax.experimental import pallas as pl
from jax.experimental.pallas import tpu as pltpu


def _cdiv(a: int, m: int) -> int:
    return -(-a // m)


def _round_up(a: int, m: int) -> int:
    return _cdiv(a, m) * m


def _vmem_capacity_bytes() -> int:
    try:
        return int(pltpu.get_tpu_info().vmem_capacity_bytes)
    except Exception:
        return 64 * 1024 * 1024   # conservative default (v7x per-TC VMEM)


def film_kernel(x_ref, aux_ref, wt_ref, b_ref, o_ref):
    S = x_ref.shape[-1]
    # Fused gamma/beta: [rt, S] @ [S, 2S] -> [rt, 2S].
    # MXU operands in the weights' dtype (bf16 by default), f32 accumulate.
    aux = aux_ref[...].astype(wt_ref.dtype)
    gb = jnp.dot(aux, wt_ref[...], preferred_element_type=jnp.float32) + b_ref[...]
    gamma = gb[:, :S]          # static, lane-aligned slices (S % 128 == 0)
    beta = gb[:, S:]
    # FiLM modulation on the VPU, in f32.
    o_ref[...] = (x_ref[...].astype(jnp.float32) * gamma + beta).astype(o_ref.dtype)


def prepare_film_params(w1, b1, w2, b2, mxu_dtype=jnp.bfloat16):
    """Hoisted one-time fusion of the two Linear layers (call once, reuse).

    Returns wt = [W1^T | W2^T] (S, 2S) in `mxu_dtype` and
            bias = [b1 | b2]   (1, 2S) in f32 (added to the f32 accumulator).
    """
    wt = jnp.concatenate([w1.T, w2.T], axis=1).astype(mxu_dtype)
    bias = jnp.concatenate([b1, b2], axis=0).reshape(1, -1).astype(jnp.float32)
    return wt, bias


def film_pallas(x, aux, wt, bias, *, row_tile=None):
    """x, aux: [B, T, S];  wt: [S, 2S] (= [W1^T | W2^T]);  bias: [1, 2S].
    Returns [B, T, S] in x.dtype."""
    B, T, S = x.shape
    assert aux.shape == (B, T, S)
    assert S % 128 == 0, "size must be a multiple of 128 for lane alignment"
    assert wt.shape == (S, 2 * S) and bias.shape == (1, 2 * S)

    R = B * T
    x2 = x.reshape(R, S)
    aux2 = aux.reshape(R, S)

    x_sz = jnp.dtype(x.dtype).itemsize
    aux_sz = jnp.dtype(aux.dtype).itemsize
    out_sz = x_sz
    wt_sz = jnp.dtype(wt.dtype).itemsize

    vmem_cap = _vmem_capacity_bytes()

    # Grid-invariant weights: single-buffer them only where the 2nd buffer
    # actually costs VMEM (large S); at S=256 it is noise and we keep the
    # default pipelining (no pipeline_mode override on the small-S path).
    single_buffer_weights = S >= 1024
    w_bufs = 1 if single_buffer_weights else 2
    weight_bytes = w_bufs * (S * 2 * S * wt_sz + 2 * S * 4)

    # ---- Row tile: as large as the VMEM budget allows (amortizes the
    # ~0.35us per-grid-step overhead, which matters most on v7x's 3.2 TB/s
    # HBM), but
    #   * sized so dbl-buffered streams + f32 gb intermediate + weights fit,
    #   * capped at cdiv(R, 2) so the 'parallel' grid has >= 2 steps and both
    #     v7x TensorCores can engage,
    #   * a multiple of 8 sublanes, preferring multiples of 256 (MXU wave).
    if row_tile is None:
        budget = min(int(0.5 * vmem_cap), 48 * 1024 * 1024)
        per_row = 2 * (x_sz + aux_sz + out_sz) * S + 2 * S * 4
        avail = max(budget - weight_bytes, 1 << 20)
        rt = max(8, avail // per_row)
        rt = (rt // 256) * 256 if rt >= 256 else (rt // 8) * 8
        rt = min(rt, 2048)
    else:
        rt = _round_up(max(8, int(row_tile)), 8)
    rt = min(rt, max(8, _round_up(_cdiv(R, 2), 8)))   # >= 2 grid steps when possible
    rt = max(rt, 8)

    # No host-side padding (it would re-read/re-write both inputs through
    # HBM): Pallas masks the ragged last tile's out-of-range rows, and each
    # output row depends only on its own x/aux row, so garbage rows in the
    # last partial block cannot leak into valid output.
    num_blocks = _cdiv(R, rt)
    grid = (num_blocks,)
    Rp = num_blocks * rt   # rows actually streamed (for the advisory estimates)

    # ---- VMEM estimate: dbl-buffered row streams + weights + f32 [rt,2S]
    # intermediate; always set the limit explicitly (v5e default scope is
    # only 16 MiB), capped at 80% of physical VMEM (~51 MiB on v7x).
    vmem_est = (2 * rt * S * (x_sz + aux_sz + out_sz)
                + weight_bytes
                + rt * 2 * S * 4)
    vmem_limit = min(max(int(1.5 * vmem_est) + (4 << 20), 32 << 20),
                     int(0.8 * vmem_cap))

    cost = pl.CostEstimate(
        flops=4 * Rp * S * S + 2 * Rp * S,             # fused matmul + FiLM mul/add
        transcendentals=0,
        bytes_accessed=(x_sz + aux_sz + out_sz) * Rp * S
                       + wt_sz * 2 * S * S + 4 * 2 * S,
    )

    wt_spec_kw = dict(pipeline_mode=pl.Buffered(1)) if single_buffer_weights else {}
    # TODO(synk): for S >= 2048 (f32 weights) add a second grid axis over the 2S
    # output columns so the weight tile fits v7x's 64 MiB VMEM.

    out = pl.pallas_call(
        film_kernel,
        out_shape=jax.ShapeDtypeStruct((R, S), x.dtype),
        grid_spec=pl.GridSpec(
            grid=grid,
            in_specs=[
                pl.BlockSpec((rt, S), lambda i: (i, 0)),                    # x rows
                pl.BlockSpec((rt, S), lambda i: (i, 0)),                    # aux rows
                pl.BlockSpec((S, 2 * S), lambda i: (0, 0), **wt_spec_kw),   # [W1^T|W2^T] (resident)
                pl.BlockSpec((1, 2 * S), lambda i: (0, 0), **wt_spec_kw),   # [b1|b2]
            ],
            out_specs=pl.BlockSpec((rt, S), lambda i: (i, 0)),
        ),
        compiler_params=pltpu.CompilerParams(
            dimension_semantics=("parallel",),
            vmem_limit_bytes=vmem_limit,
        ),
        cost_estimate=cost,
    )(x2, aux2, wt, bias)

    return out.reshape(B, T, S)


def film_reference(x, aux, w1, b1, w2, b2):
    gamma = jnp.einsum("bts,os->bto", aux, w1) + b1
    beta = jnp.einsum("bts,os->bto", aux, w2) + b2
    return x * gamma + beta


if __name__ == "__main__":
    # Small shapes consistent with the module (S = Linear width = 256).
    # T = 9 makes R = B*T = 18, which is NOT a multiple of the row tile, so
    # the ragged-last-tile (no host-side padding) path is exercised.
    B, T, SIZE = 2, 9, 256

    key = jax.random.PRNGKey(0)
    kx, kaux, kw1, kb1, kw2, kb2 = jax.random.split(key, 6)

    # PyTorch-style uniform(-1/sqrt(in), 1/sqrt(in)) init.
    bound = 1.0 / (SIZE ** 0.5)
    w1 = jax.random.uniform(kw1, (SIZE, SIZE), jnp.float32, -bound, bound)
    b1 = jax.random.uniform(kb1, (SIZE,), jnp.float32, -bound, bound)
    w2 = jax.random.uniform(kw2, (SIZE, SIZE), jnp.float32, -bound, bound)
    b2 = jax.random.uniform(kb2, (SIZE,), jnp.float32, -bound, bound)

    x = jax.random.normal(kx, (B, T, SIZE), jnp.float32)
    aux = jax.random.normal(kaux, (B, T, SIZE), jnp.float32)

    # One-time (hoisted) fusion of the two Linears; bf16 MXU operands.
    wt, bias = prepare_film_params(w1, b1, w2, b2)

    out = film_pallas(x, aux, wt, bias)
    out = jax.block_until_ready(out)

    ref = film_reference(x, aux, w1, b1, w2, b2)
    assert out.shape == ref.shape
    # bf16 MXU operands with f32 accumulate/FiLM -> slightly looser tolerance.
    assert jnp.allclose(out, ref, atol=3e-2, rtol=3e-2), "mismatch vs reference"

    print("KERNEL_OK")
</pallas_src>

<mosaic_0001>
module attributes {stable_mosaic.version = 11 : i64} {
  func.func @film_kernel(%arg0: i32, %arg1: memref<16x256xf32, #tpu.memory_space<vmem>>, %arg2: memref<16x256xf32, #tpu.memory_space<vmem>>, %arg3: memref<256x512xbf16, #tpu.memory_space<vmem>>, %arg4: memref<1x512xf32, #tpu.memory_space<vmem>>, %arg5: memref<16x256xf32, #tpu.memory_space<vmem>>) attributes {dimension_semantics = [#tpu.dimension_semantics<parallel>], iteration_bounds = array<i64: 2>, scalar_prefetch = 0 : i64, scratch_operands = 0 : i64, tpu.core_type = #tpu.core_type<tc>, window_params = [{transform_indices = @transform_0, window_bounds = array<i64: 16, 256>}, {transform_indices = @transform_1, window_bounds = array<i64: 16, 256>}, {pipeline_mode = #tpu.pipeline_mode<synchronous>, transform_indices = @transform_2, window_bounds = array<i64: 256, 512>}, {pipeline_mode = #tpu.pipeline_mode<synchronous>, transform_indices = @transform_3, window_bounds = array<i64: 1, 512>}, {transform_indices = @transform_4, window_bounds = array<i64: 16, 256>}]} {
    %c0 = arith.constant 0 : index
    %c0_0 = arith.constant 0 : index
    %0 = vector.load %arg2[%c0, %c0_0] : memref<16x256xf32, #tpu.memory_space<vmem>>, vector<16x256xf32>
    %1 = arith.truncf %0 : vector<16x256xf32> to vector<16x256xbf16>
    %c0_1 = arith.constant 0 : index
    %c0_2 = arith.constant 0 : index
    %2 = vector.load %arg3[%c0_1, %c0_2] : memref<256x512xbf16, #tpu.memory_space<vmem>>, vector<256x512xbf16>
    %cst = arith.constant dense<0.000000e+00> : vector<16x512xf32>
    %3 = tpu.matmul %1, %2, %cst {dimension_numbers = #tpu.dot_dimension_numbers<[1], [0], [0], [1], [0, 0, 1, 1], [], []>} : vector<16x256xbf16>, vector<256x512xbf16>, vector<16x512xf32> -> vector<16x512xf32>
    %c0_3 = arith.constant 0 : index
    %c0_4 = arith.constant 0 : index
    %4 = vector.load %arg4[%c0_3, %c0_4] : memref<1x512xf32, #tpu.memory_space<vmem>>, vector<1x512xf32>
    %5 = vector.broadcast %4 : vector<1x512xf32> to vector<16x512xf32>
    %6 = arith.addf %3, %5 : vector<16x512xf32>
    %7 = vector.extract_strided_slice %6 {offsets = [0, 0], sizes = [16, 256], strides = [1, 1]} : vector<16x512xf32> to vector<16x256xf32>
    %8 = vector.extract_strided_slice %6 {offsets = [0, 256], sizes = [16, 256], strides = [1, 1]} : vector<16x512xf32> to vector<16x256xf32>
    %c0_5 = arith.constant 0 : index
    %c0_6 = arith.constant 0 : index
    %9 = vector.load %arg1[%c0_5, %c0_6] : memref<16x256xf32, #tpu.memory_space<vmem>>, vector<16x256xf32>
    %10 = arith.mulf %9, %7 : vector<16x256xf32>
    %11 = arith.addf %10, %8 : vector<16x256xf32>
    %c0_7 = arith.constant 0 : index
    %c0_8 = arith.constant 0 : index
    %12 = vector.load %arg5[%c0_7, %c0_8] : memref<16x256xf32, #tpu.memory_space<vmem>>, vector<16x256xf32>
    tpu.vector_store %arg5[%c0_7, %c0_8], %11 {strides = array<i32>} : memref<16x256xf32, #tpu.memory_space<vmem>>, vector<16x256xf32>,
    return
  }
  func.func @transform_0(%arg0: i32) -> (i32, i32) {
    %c0_i32 = arith.constant 0 : i32
    %c0_i32_0 = arith.constant 0 : i32
    return %arg0, %c0_i32 : i32, i32
  }
  func.func @transform_1(%arg0: i32) -> (i32, i32) {
    %c0_i32 = arith.constant 0 : i32
    %c0_i32_0 = arith.constant 0 : i32
    return %arg0, %c0_i32 : i32, i32
  }
  func.func @transform_2(%arg0: i32) -> (i32, i32) {
    %c0_i32 = arith.constant 0 : i32
    %c0_i32_0 = arith.constant 0 : i32
    %c0_i32_1 = arith.constant 0 : i32
    return %c0_i32, %c0_i32_0 : i32, i32
  }
  func.func @transform_3(%arg0: i32) -> (i32, i32) {
    %c0_i32 = arith.constant 0 : i32
    %c0_i32_0 = arith.constant 0 : i32
    %c0_i32_1 = arith.constant 0 : i32
    return %c0_i32, %c0_i32_0 : i32, i32
  }
  func.func @transform_4(%arg0: i32) -> (i32, i32) {
    %c0_i32 = arith.constant 0 : i32
    %c0_i32_0 = arith.constant 0 : i32
    return %arg0, %c0_i32 : i32, i32
  }
}

</mosaic_0001>

<bundles_post_ra>
// kernel: tpu_custom_call.1
= control target key start
LH: loop header
LB: loop body
LE: loop exit
PB: predicated region body
PF: predicated region fallthrough
CT: control target
= control target key end

     0   :  { %9 = vsyncpa [#allocation3], 0  ;;  %s1690_s0 = inlined_call_operand.hbm [shape: f32[18,256], index: 0, kind: input, shape index: {}]   ;;  %s1691_s1 = inlined_call_operand.hbm [shape: f32[18,256], index: 1, kind: input, shape index: {}]   ;;  %s1692_s2 = inlined_call_operand.hbm [shape: bf16[256,512], index: 2, kind: input, shape index: {}]   ;;  %s1693_s3 = inlined_call_operand.vmem [shape: f32[1,512], index: 3, kind: input, shape index: {}]   ;;  %s1694_s4 = inlined_call_operand.hbm [shape: f32[18,256], index: 4, kind: output, shape index: {}]  }
   0x1   :  { %11 = vsyncpa [#allocation3 + $0x1], 0 }
   0x2   :  { %12 = vsyncpa [#allocation6], 0 }
   0x3   :  { %14 = vsyncpa [#allocation6 + $0x1], 0 }
   0x4   :  { %15 = vsyncpa [#allocation4], 0 }
   0x5   :  { %17 = vsyncpa [#allocation4 + $0x1], 0  ;;  %s1408_s15 = smov 0   ;;  %s1410_s16 = smov 0  }
   0x6   :  { %s1412_s17 = smov 0   ;;  %s1414_s18 = smov 0  }
   0x7 LB: > { %s1429_s19 = sadd.s32 4294967295, %s1369_s18   ;;  %s945_s20 = sadd.s32 4294967294, %s1369_s18   ;;  %s1369_s18 = sphi %s1414_s18, %s1715_s18   ;;  %s1365_s17 = sphi %s1412_s17, %s1714_s17   ;;  %s1361_s16 = sphi %s1410_s16, %s1713_s16   ;;  %s1357_s15 = sphi %s1408_s15, %s1712_s15  }
   0x8   : > { %s1433_s21 = sadd.s32 1, %s1369_s18   ;;  %s30_s22 = sadd.s32 1, %s1365_s17 }
   0x9   : > { %s27_s23 = ssub.s32 %s1369_s18, %s1433_s21  ;;  %p37_p0 = scmp.ne.s32.totalorder %s1365_s17, %s1361_s16 }
   0xa   : > { %p28_p1 = scmp.eq.s32.totalorder %s27_s23, 0  ;;  %p38_p2 = scmp.eq.s32.totalorder %s1369_s18, 0 }
   0xb   : > { %p43_p3 = scmp.ne.s32.totalorder %s1361_s16, %s1357_s15  ;;  %p1695_p4 = scmp.eq.s32.totalorder %s1429_s19, 0 }
   0xc   : > { %s1445_s24 = scalar_select %p28_p1, %s1365_s17, %s30_s22  }
   0xd   : > { %p1447_p5 = por %p38_p2, %p37_p0  ;;  %p1453_p6 = por %p1695_p4, %p43_p3 }
   0xe   : > { %p135_p7 = scmp.eq.s32.totalorder %s1429_s19, 1  ;;  %p141_p8 = scmp.eq.s32.totalorder %s945_s20, 1 }
   0xf   : > { %s1698_s25 = scalar_select %p1447_p5, 1, 0 }
  0x10   : > { %s1699_s26 = scalar_select %p1453_p6, 1, 0 }
  0x11   : > { %p946_p9 = scmp.ge.s32.totalorder %s1369_s18, 1  ;;  %p148_p10 = scmp.lt.s32.totalorder %s1369_s18, 3 }
  0x12   : > { %p1460_p11 = por %p135_p7, %p37_p0  ;;  %p1464_p12 = por %p141_p8, %p43_p3 }
  0x13   : > { %p1468_p13 = pnand %p946_p9, %p148_p10  ;;  %s1371_s30 = smov [#allocation7]  }
  0x14   : > { %s1700_s27 = scalar_select %p1460_p11, 1, 0 }
  0x15   : > { %s1701_s28 = scalar_select %p1464_p12, 1, 0 }
  0x16   : > { %s1702_s29 = scalar_select %p1468_p13, 1, 0 }
  0x17   : > { %p1063_p1 = pneg %p1468_p13  ;;  %s160_s5 = sshll.u32 %s1371_s30, 4  ;;  %s161_s5 = int_to_ptr.vmem [resolvable:$true] %s160_s5 }
  0x18   : > { %s1211_s9 = scalar_lea.hbm %s1692_s2, 8192 }
  0x19   : > { %p1476_p2 = pnand %p1063_p1, %p1695_p4  ;;  %p1212_p0 = scmp.ne.s32.totalorder %s1692_s2, %s1211_s9 }
  0x1a   : > { %p1218_p9 = scmp.lt.u32.totalorder %s1211_s9, %s1692_s2 }
  0x1b   : > { %p1213_p3 = pneg %p1476_p2 }
  0x1d   : > { %p1214_p7 = pnand %p1213_p3, %p1212_p0 }
  0x1f   : > { %p1215_p8 = pneg %p1214_p7 }
  0x21   : > { %p1220_p10 = pnand %p1218_p9, %p1215_p8 }
  0x23   : > { %1223 = shalt.err (!%p1220_p10)
}
  0x24   : > { %s1224_s14 = scalar_lea.vmem %s161_s5, 8192  ;;  %p1232_p11 = scmp.lt.s32.totalorder %s161_s5, %s161_s5 }
  0x25   : > { %p1225_p1 = scmp.ne.s32.totalorder %s161_s5, %s1224_s14  ;;  %p1233_p6 = scmp.lt.s32.totalorder %s1224_s14, %s1224_s14 }
  0x27   : > { %p1227_p4 = pnand %p1225_p1, %p1213_p3  ;;  %p1234_p13 = por %p1233_p6, %p1232_p11 }
  0x29   : > { %p1228_p12 = pneg %p1227_p4 }
  0x2b   : > { %p1235_p5 = pnand %p1234_p13, %p1228_p12 }
  0x2d   : > { %1238 = shalt.err (!%p1235_p5)
}
  0x2e   : > { %s1372_s20 = smov 256   ;;  %s1373_s22 = smov 16  }
  0x2f   : > { %1066 = dma.hbm_to_vmem [thread:$0]  (!%p1476_p2), %s1692_s2, 8192, %s161_s5, [#allocation6], %s1372_s20, %s1372_s20, %s1373_s22  }
  0x30   : > { %p948_p0 = scmp.ge.s32.totalorder %s1369_s18, 2 }
  0x31   : > { %p1704_p4 = scmp.ne.s32.totalorder (!%p948_p0), %s1698_s25, 0 }
  0x32   : > { %173 = sbr.rel (%p948_p0) target bundleno = 129 (0x81), region = 24 }
  0x39   : > { %176 = sbr.rel (!%p1704_p4) target bundleno = 92 (0x5c), region = 28  ;;  %s177_s7 = sand.u32 (%p1704_p4), 1, %s1365_s17  }
  0x3a   : > { %s950_s8 = sshll.u32 (%p1704_p4), %s1369_s18, 1  ;;  %s949_s9 = sshll.u32 (%p1704_p4), %s177_s7, 5 }
  0x3b   : > { %s183_s10 = ssub.s32 (%p1704_p4), 3, %s950_s8  ;;  %s1506_s11 = scalar_lea.sflag (%p1704_p4), [#allocation3], %s177_s7 }
  0x3c   : > { %p184_p5 = scmp.lt.s32.totalorder (%p1704_p4), %s183_s10, 2  ;;  %s181_s12 = scalar_lea.vmem (%p1704_p4), [#allocation2], %s949_s9 }
  0x40   : > { %s1717_s10 = smov (!%p184_p5, %s183_s10), 2 }
  0x41   : > { %s1503_s6 = sshll.u32 %s1717_s10, 8 }
  0x42   : > { %s189_s5 = ssub.s32 512, %s1503_s6 }
  0x43   : > { %190 = vsyncadd %s1506_s11, %s189_s5  ;;  %p953_p6 = scmp.ne.s32.totalorder %s1503_s6, 0  ;;  %s1049_s13 = sshll.u32 %s1369_s18, 9 }
  0x44   : > { %s1514_s22 = scalar_lea.hbm %s1690_s0, %s1049_s13  ;;  %s196_s23 = sshll.u32 %s181_s12, 4  ;;  %s1516_s23 = int_to_ptr.vmem [resolvable:$true] %s196_s23 }
  0x45   : > { %s1239_s30 = scalar_lea.hbm %s1514_s22, %s1503_s6  ;;  %s1243_s9 = scalar_lea.hbm %s1690_s0, 768 }
  0x46   : > { %p1240_p11 = scmp.ne.s32.totalorder %s1514_s22, %s1239_s30  ;;  %p1244_p2 = scmp.lt.u32.totalorder %s1514_s22, %s1690_s0 }
  0x47   : > { %p1245_p3 = scmp.lt.u32.totalorder %s1243_s9, %s1239_s30  ;;  %p1247_p8 = scmp.lt.u32.totalorder %s1239_s30, %s1514_s22 }
  0x48   : > { %p1241_p12 = pnand %p1240_p11, %p953_p6 }
  0x49   : > { %p1246_p7 = por %p1245_p3, %p1244_p2 }
  0x4a   : > { %p1242_p13 = pneg %p1241_p12 }
  0x4b   : > { %p1248_p9 = por %p1247_p8, %p1246_p7 }
  0x4d   : > { %p1249_p10 = pnand %p1248_p9, %p1242_p13 }
  0x4f   : > { %1252 = shalt.err (!%p1249_p10)
}
  0x50   : > { %s1253_s12 = scalar_lea.vmem %s1516_s23, %s1503_s6  ;;  %s1374_s13 = smov [#allocation2]  }
  0x51   : > { %p1254_p1 = scmp.ne.s32.totalorder %s1516_s23, %s1253_s12  ;;  %s1257_s14 = sshll.u32 %s1374_s13, 4  ;;  %s1258_s14 = int_to_ptr.vmem [resolvable:$false] %s1257_s14 }
  0x52   : > { %s1259_s20 = scalar_lea.vmem %s1258_s14, 1024  ;;  %p1260_p11 = scmp.lt.s32.totalorder %s1516_s23, %s1258_s14 }
  0x53   : > { %p1255_p4 = pnand %p1254_p1, %p953_p6  ;;  %p1261_p12 = scmp.lt.s32.totalorder %s1259_s20, %s1253_s12 }
  0x55   : > { %p1256_p5 = pneg %p1255_p4  ;;  %p1262_p2 = por %p1261_p12, %p1260_p11 }
  0x57   : > { %p1263_p3 = pnand %p1262_p2, %p1256_p5 }
  0x59   : > { %1266 = shalt.err (!%p1263_p3)
}
  0x5a   : > { %s1375_s30 = smov 256   ;;  %s1376_s7 = smov 16  }
  0x5b   : > { %202 = dma.hbm_to_vmem [thread:$0]  (%p953_p6), %s1514_s22, %s1503_s6, %s1516_s23, %s1506_s11, %s1375_s30, %s1375_s30, %s1376_s7  }
  0x5c PF: > { %p1705_p13 = scmp.ne.s32.totalorder %s1698_s25, 0 }
  0x5d   : > { %s206_s8 = sand.u32 (%p1705_p13), 1, %s1369_s18   ;;  %s208_s9 = sand.u32 (%p1705_p13), 1, %s1365_s17  }
  0x5e   : > { %205 = sbr.rel (!%p1705_p13) target bundleno = 129 (0x81), region = 32  ;;  %s958_s10 = sshll.u32 (%p1705_p13), %s208_s9, 5 }
  0x5f   : > { %s959_s5 = sshll.u32 (%p1705_p13), %s1369_s18, 1  ;;  %s1551_s20 = scalar_lea.sflag (%p1705_p13), [#allocation6], %s206_s8 }
  0x60   : > { %s212_s12 = ssub.s32 (%p1705_p13), 3, %s959_s5  ;;  %s210_s6 = scalar_lea.vmem (%p1705_p13), [#allocation5], %s958_s10 }
  0x61   : > { %p213_p7 = scmp.lt.s32.totalorder (%p1705_p13), %s212_s12, 2 }
  0x65   : > { %s1719_s12 = smov (!%p213_p7, %s212_s12), 2 }
  0x66   : > { %s1548_s13 = sshll.u32 %s1719_s12, 8 }
  0x67   : > { %s218_s14 = ssub.s32 512, %s1548_s13 }
  0x68   : > { %219 = vsyncadd %s1551_s20, %s218_s14  ;;  %p962_p6 = scmp.ne.s32.totalorder %s1548_s13, 0  ;;  %s1052_s25 = sshll.u32 %s1369_s18, 9 }
  0x69   : > { %s1559_s23 = scalar_lea.hbm %s1691_s1, %s1052_s25  ;;  %s225_s30 = sshll.u32 %s210_s6, 4  ;;  %s1561_s30 = int_to_ptr.vmem [resolvable:$true] %s225_s30 }
  0x6a   : > { %s1267_s7 = scalar_lea.hbm %s1559_s23, %s1548_s13  ;;  %s1271_s10 = scalar_lea.hbm %s1691_s1, 768 }
  0x6b   : > { %p1268_p8 = scmp.ne.s32.totalorder %s1559_s23, %s1267_s7  ;;  %p1272_p1 = scmp.lt.u32.totalorder %s1559_s23, %s1691_s1 }
  0x6c   : > { %p1273_p4 = scmp.lt.u32.totalorder %s1271_s10, %s1267_s7  ;;  %p1275_p11 = scmp.lt.u32.totalorder %s1267_s7, %s1559_s23 }
  0x6d   : > { %p1269_p9 = pnand %p1268_p8, %p962_p6 }
  0x6e   : > { %p1274_p5 = por %p1273_p4, %p1272_p1 }
  0x6f   : > { %p1270_p10 = pneg %p1269_p9 }
  0x70   : > { %p1276_p12 = por %p1275_p11, %p1274_p5 }
  0x72   : > { %p1277_p2 = pnand %p1276_p12, %p1270_p10 }
  0x74   : > { %1280 = shalt.err (!%p1277_p2)
}
  0x75   : > { %s1281_s14 = scalar_lea.vmem %s1561_s30, %s1548_s13  ;;  %s1377_s6 = smov [#allocation5]  }
  0x76   : > { %p1282_p3 = scmp.ne.s32.totalorder %s1561_s30, %s1281_s14  ;;  %s1285_s25 = sshll.u32 %s1377_s6, 4  ;;  %s1286_s25 = int_to_ptr.vmem [resolvable:$false] %s1285_s25 }
  0x77   : > { %s1287_s11 = scalar_lea.vmem %s1286_s25, 1024  ;;  %p1288_p8 = scmp.lt.s32.totalorder %s1561_s30, %s1286_s25 }
  0x78   : > { %p1283_p13 = pnand %p1282_p3, %p962_p6  ;;  %p1289_p9 = scmp.lt.s32.totalorder %s1287_s11, %s1281_s14 }
  0x7a   : > { %p1284_p7 = pneg %p1283_p13  ;;  %p1290_p1 = por %p1289_p9, %p1288_p8 }
  0x7c   : > { %p1291_p4 = pnand %p1290_p1, %p1284_p7 }
  0x7e   : > { %1294 = shalt.err (!%p1291_p4)
}
  0x7f   : > { %s1378_s22 = smov 256   ;;  %s1379_s7 = smov 16  }
  0x80   : > { %231 = dma.hbm_to_vmem [thread:$0]  (%p962_p6), %s1559_s23, %s1548_s13, %s1561_s30, %s1551_s20, %s1378_s22, %s1378_s22, %s1379_s7  }
  0x81 PF: > { %p1706_p10 = scmp.ne.s32.totalorder %s1702_s29, 0 }
  0x82   : > { %s1591_s8 = sand.u32 (!%p1706_p10), 1, %s1361_s16   ;;  %p1707_p5 = scmp.ne.s32.totalorder (!%p1706_p10), %s1699_s26, 0 }
  0x83   : > { %237 = sbr.rel (%p1706_p10) target bundleno = 460 (0x1cc), region = 36  ;;  %s1594_s9 = sshll.u32 (!%p1706_p10), %s1591_s8, 5 }
  0x84   : > { %s240_s10 = scalar_lea.sflag (!%p1706_p10), [#allocation3], %s1591_s8  ;;  %s1598_s5 = scalar_lea.vmem (!%p1706_p10), [#allocation2], %s1594_s9 }
  0x8a   : > { %1340 = dma.done.wait (%p1707_p5), %s240_s10, 512  }
  0x8b   : > { %1342 = vsyncadd (%p1707_p5), %s240_s10, 4294966784  ;;  %s248_s29 = sand.u32 1, %s1429_s19   ;;  %s1606_s20 = scalar_lea.vmem [#allocation5], %s1594_s9 }
  0x8c   : > { %s249_s13 = scalar_lea.sflag [#allocation6], %s248_s29 }
  0x8d   : > { %1344 = dma.done.wait (%p1707_p5), %s249_s13, 512  }
  0x8e   : > { %1346 = vsyncadd (%p1707_p5), %s249_s13, 4294966784  ;;  %p1708_p6 = scmp.eq.s32.totalorder %s1429_s19, 0 }
  0x90   : > { %1348 = dma.done.wait (%p1708_p6), [#allocation6], 8192   ;;  %p1709_p11 = pmov %p1708_p6 }
  0x91   : > { %v1115_v0 = vld [vmem:[#allocation7 + $0x4] ss:$16 sps:$4 sm:$0xff]   ;;  %v1117_v1 = vld [vmem:[#allocation7 + $0xc] ss:$16 sps:$4 sm:$0xff]   ;;  %v1119_v2 = vld [vmem:[#allocation7] ss:$16 sps:$4 sm:$0xff]  }
  0x92   : > { %1350 = vsyncadd (%p1709_p11), [#allocation6], 4294959104  ;;  %716 = vmatprep.subr.bf16.mxu0 %v1115_v0  ;;  %v1120_v3 = vld [vmem:[#allocation7 + $0x8] ss:$16 sps:$4 sm:$0xff]   ;;  %759 = vmatprep.subr.bf16.mxu1 %v1117_v1  ;;  %v1121_v4 = vld [vmem:[#allocation7 + $0x24] ss:$16 sps:$4 sm:$0xff]  }
  0x93   : > { %717 = vmatpush1.bf16.msra.mxu0 %v1119_v2  ;;  %760 = vmatpush1.bf16.msra.mxu1 %v1120_v3  ;;  %v1123_v5 = vld [vmem:[#allocation7 + $0x2c] ss:$16 sps:$4 sm:$0xff]   ;;  %v1125_v6 = vld [vmem:[#allocation7 + $0x20] ss:$16 sps:$4 sm:$0xff]   ;;  %v1126_v7 = vld [vmem:[#allocation7 + $0x28] ss:$16 sps:$4 sm:$0xff]  }
  0x94   : > { %718 = vmatprep.subr.bf16.mxu0 %v1121_v4  ;;  %761 = vmatprep.subr.bf16.mxu1 %v1123_v5  ;;  %v1127_v8 = vld [vmem:[#allocation7 + $0x44] ss:$16 sps:$4 sm:$0xff]   ;;  %v1129_v9 = vld [vmem:[#allocation7 + $0x4c] ss:$16 sps:$4 sm:$0xff]   ;;  %v1131_v10 = vld [vmem:[#allocation7 + $0x40] ss:$16 sps:$4 sm:$0xff]  }
  0x95   : > { %v1132_v11 = vld [vmem:[#allocation7 + $0x48] ss:$16 sps:$4 sm:$0xff]   ;;  %v1133_v12 = vld [vmem:[#allocation7 + $0x64] ss:$16 sps:$4 sm:$0xff]   ;;  %v1135_v13 = vld [vmem:[#allocation7 + $0x6c] ss:$16 sps:$4 sm:$0xff]  }
  0x96   : > { %v1137_v14 = vld [vmem:[#allocation7 + $0x60] ss:$16 sps:$4 sm:$0xff]   ;;  %v1138_v15 = vld [vmem:[#allocation7 + $0x68] ss:$16 sps:$4 sm:$0xff]   ;;  %v1139_v16 = vld [vmem:[#allocation7 + $0x84] ss:$16 sps:$4 sm:$0xff]  }
  0x97   : > { %719 = vmatpush1.bf16.msra.mxu0 %v1125_v6  ;;  %762 = vmatpush1.bf16.msra.mxu1 %v1126_v7  ;;  %v1141_v17 = vld [vmem:[#allocation7 + $0x8c] ss:$16 sps:$4 sm:$0xff]   ;;  %v1143_v18 = vld [vmem:[#allocation7 + $0x80] ss:$16 sps:$4 sm:$0xff]   ;;  %v1144_v19 = vld [vmem:[#allocation7 + $0x88] ss:$16 sps:$4 sm:$0xff]   ;;  %v376_v6 = vlaneseq }
  0x98   : > { %720 = vmatprep.subr.bf16.mxu0 %v1127_v8  ;;  %763 = vmatprep.subr.bf16.mxu1 %v1129_v9  ;;  %v1145_v20 = vld [vmem:[#allocation7 + $0xa4] ss:$16 sps:$4 sm:$0xff]   ;;  %v1147_v21 = vld [vmem:[#allocation7 + $0xac] ss:$16 sps:$4 sm:$0xff]   ;;  %v1149_v22 = vld [vmem:[#allocation7 + $0xa0] ss:$16 sps:$4 sm:$0xff]  }
  0x99   : > { %v1150_v23 = vld [vmem:[#allocation7 + $0xa8] ss:$16 sps:$4 sm:$0xff]   ;;  %v1151_v24 = vld [vmem:[#allocation7 + $0xc4] ss:$16 sps:$4 sm:$0xff]   ;;  %v1153_v25 = vld [vmem:[#allocation7 + $0xcc] ss:$16 sps:$4 sm:$0xff]  }
  0x9a   : > { %v1155_v26 = vld [vmem:[#allocation7 + $0xc0] ss:$16 sps:$4 sm:$0xff]   ;;  %v1156_v27 = vld [vmem:[#allocation7 + $0xc8] ss:$16 sps:$4 sm:$0xff]   ;;  %v1157_v28 = vld [vmem:[#allocation7 + $0xe4] ss:$16 sps:$4 sm:$0xff]  }
  0x9b   : > { %721 = vmatpush1.bf16.msra.mxu0 %v1131_v10  ;;  %764 = vmatpush1.bf16.msra.mxu1 %v1132_v11  ;;  %v1159_v29 = vld [vmem:[#allocation7 + $0xec] ss:$16 sps:$4 sm:$0xff]   ;;  %v1161_v30 = vld [vmem:[#allocation7 + $0xe0] ss:$16 sps:$4 sm:$0xff]   ;;  %v1162_v31 = vld [vmem:[#allocation7 + $0xe8] ss:$16 sps:$4 sm:$0xff]  }
  0x9c   : > { %722 = vmatprep.subr.bf16.mxu0 %v1133_v12  ;;  %765 = vmatprep.subr.bf16.mxu1 %v1135_v13  ;;  %v1163_v32 = vld [vmem:[#allocation7 + $0x104] ss:$16 sps:$4 sm:$0xff]   ;;  %v1165_v33 = vld [vmem:[#allocation7 + $0x10c] ss:$16 sps:$4 sm:$0xff]   ;;  %v1167_v34 = vld [vmem:[#allocation7 + $0x100] ss:$16 sps:$4 sm:$0xff]  }
  0x9d   : > { %v1168_v35 = vld [vmem:[#allocation7 + $0x108] ss:$16 sps:$4 sm:$0xff]   ;;  %v1169_v36 = vld [vmem:[#allocation7 + $0x124] ss:$16 sps:$4 sm:$0xff]   ;;  %v1171_v37 = vld [vmem:[#allocation7 + $0x12c] ss:$16 sps:$4 sm:$0xff]  }
  0x9e   : > { %v1173_v38 = vld [vmem:[#allocation7 + $0x120] ss:$16 sps:$4 sm:$0xff]   ;;  %v1174_v39 = vld [vmem:[#allocation7 + $0x128] ss:$16 sps:$4 sm:$0xff]   ;;  %v1175_v40 = vld [vmem:[#allocation7 + $0x144] ss:$16 sps:$4 sm:$0xff]  }
  0x9f   : > { %723 = vmatpush1.bf16.msra.mxu0 %v1137_v14  ;;  %766 = vmatpush1.bf16.msra.mxu1 %v1138_v15  ;;  %v1177_v41 = vld [vmem:[#allocation7 + $0x14c] ss:$16 sps:$4 sm:$0xff]   ;;  %v1179_v42 = vld [vmem:[#allocation7 + $0x140] ss:$16 sps:$4 sm:$0xff]   ;;  %v1180_v43 = vld [vmem:[#allocation7 + $0x148] ss:$16 sps:$4 sm:$0xff]  }
  0xa0   : > { %724 = vmatprep.subr.bf16.mxu0 %v1139_v16  ;;  %767 = vmatprep.subr.bf16.mxu1 %v1141_v17  ;;  %v1181_v44 = vld [vmem:[#allocation7 + $0x164] ss:$16 sps:$4 sm:$0xff]   ;;  %v1183_v45 = vld [vmem:[#allocation7 + $0x16c] ss:$16 sps:$4 sm:$0xff]   ;;  %v1185_v48 = vld [vmem:[#allocation7 + $0x160] ss:$16 sps:$4 sm:$0xff]  }
  0xa1   : > { %v305_v46 = vld [vmem:[%s1606_s20 + $0x8] sm:$0xff]  ;;  %v307_v47 = vld [vmem:[%s1606_s20 + $0x18] sm:$0xff]  ;;  %v1187_v51 = vld [vmem:[#allocation7 + $0x184] ss:$16 sps:$4 sm:$0xff]   ;;  %v377_v7 = vshrl.u32 %v376_v6, 7  ;;  %s285_s30 = scalar_lea.vmem [#allocation8], %s1594_s9 }
  0xa2   : > { %v1186_v49 = vld [vmem:[#allocation7 + $0x168] ss:$16 sps:$4 sm:$0xff]   ;;  %v309_v50 = vpack.c.bf16 %v307_v47, %v305_v46  ;;  %v1189_v52 = vld [vmem:[#allocation7 + $0x18c] ss:$16 sps:$4 sm:$0xff]   ;;  %v1191_v53 = vld [vmem:[#allocation7 + $0x180] ss:$16 sps:$4 sm:$0xff]  }
  0xa3   : > { %725 = vmatpush1.bf16.msra.mxu0 %v1143_v18  ;;  %768 = vmatpush1.bf16.msra.mxu1 %v1144_v19  ;;  %v1192_v54 = vld [vmem:[#allocation7 + $0x188] ss:$16 sps:$4 sm:$0xff]   ;;  %v1193_v55 = vld [vmem:[#allocation7 + $0x1a4] ss:$16 sps:$4 sm:$0xff]   ;;  %v1195_v56 = vld [vmem:[#allocation7 + $0x1ac] ss:$16 sps:$4 sm:$0xff]  }
  0xa4   : > { %726 = vmatprep.subr.bf16.mxu0 %v1145_v20  ;;  %769 = vmatprep.subr.bf16.mxu1 %v1147_v21  ;;  %v1197_v57 = vld [vmem:[#allocation7 + $0x1a0] ss:$16 sps:$4 sm:$0xff]   ;;  %v1198_v58 = vld [vmem:[#allocation7 + $0x1a8] ss:$16 sps:$4 sm:$0xff]   ;;  %v1199_v59 = vld [vmem:[#allocation7 + $0x1c4] ss:$16 sps:$4 sm:$0xff]  }
  0xa5   : > { %748 = vmatprep.mubr.bf16.mxu0 %v309_v50  ;;  %791 = vmatprep.mubr.bf16.mxu1 %v309_v50  ;;  %v1201_v60 = vld [vmem:[#allocation7 + $0x1cc] ss:$16 sps:$4 sm:$0xff]   ;;  %v1203_v61 = vld [vmem:[#allocation7 + $0x1c0] ss:$16 sps:$4 sm:$0xff]   ;;  %v1204_v62 = vld [vmem:[#allocation7 + $0x1c8] ss:$16 sps:$4 sm:$0xff]  }
  0xa6   : > { %v1205_v63 = vld [vmem:[#allocation7 + $0x1e4] ss:$16 sps:$4 sm:$0xff]   ;;  %v1207_v0 = vld [vmem:[#allocation7 + $0x1ec] ss:$16 sps:$4 sm:$0xff]   ;;  %v1209_v1 = vld [vmem:[#allocation7 + $0x1e0] ss:$16 sps:$4 sm:$0xff]  }
  0xa7   : > { %727 = vmatpush1.bf16.msra.mxu0 %v1149_v22  ;;  %770 = vmatpush1.bf16.msra.mxu1 %v1150_v23  ;;  %v1210_v2 = vld [vmem:[#allocation7 + $0x1e8] ss:$16 sps:$4 sm:$0xff]   ;;  %v304_v3 = vld [vmem:[%s1606_s20] sm:$0xff]  ;;  %v306_v4 = vld [vmem:[%s1606_s20 + $0x10] sm:$0xff]  ;;  %v378_v8 = vsub.s32 0, %v377_v7  ;;  %v386_v9 = vsub.s32 2, %v377_v7 }
  0xa8   : > { %728 = vmatprep.subr.bf16.mxu0 %v1151_v24  ;;  %771 = vmatprep.subr.bf16.mxu1 %v1153_v25  ;;  %v308_v5 = vpack.c.bf16 %v306_v4, %v304_v3  ;;  %v374_v10 = vld [vmem:[%s1693_s3] sm:$0xf]  ;;  %v382_v11 = vsub.s32 1, %v377_v7  ;;  %v390_v12 = vsub.s32 3, %v377_v7  ;;  %v803_v23 = vld [vmem:[%s1598_s5 + $0x8] sm:$0xff]  ;;  %s819_s12 = scalar_lea.sflag [#allocation4], %s1591_s8 }
  0xa9   : > { %v379_v13 = vrot.slane %v374_v10, %v378_v8  ;;  %v387_v14 = vrot.slane %v374_v10, %v386_v9  ;;  %v802_v18 = vld [vmem:[%s1598_s5] sm:$0xff]  ;;  %p1710_p12 = scmp.ne.s32.totalorder %s1700_s27, 0 }
  0xaa   : > { %v383_v15 = vrot.slane %v374_v10, %v382_v11  ;;  %v391_v16 = vrot.slane %v374_v10, %v390_v12  ;;  %s1037_s14 = sshll.u32 (%p1710_p12), %s1429_s19, 1 }
  0xab   : > { %729 = vmatpush1.bf16.msra.mxu0 %v1155_v26  ;;  %772 = vmatpush1.bf16.msra.mxu1 %v1156_v27  ;;  %s827_s6 = ssub.s32 (%p1710_p12), 3, %s1037_s14 }
  0xac   : > { %730 = vmatprep.subr.bf16.mxu0 %v1157_v28  ;;  %773 = vmatprep.subr.bf16.mxu1 %v1159_v29  ;;  %v804_v28 = vld [vmem:[%s1598_s5 + $0x10] sm:$0xff]  ;;  %p828_p2 = scmp.lt.s32.totalorder (%p1710_p12), %s827_s6, 2 }
  0xaf   : > { %731 = vmatpush1.bf16.msra.mxu0 %v1161_v30  ;;  %774 = vmatpush1.bf16.msra.mxu1 %v1162_v31 }
  0xb0   : > { %732 = vmatprep.subr.bf16.mxu0 %v1163_v32  ;;  %775 = vmatprep.subr.bf16.mxu1 %v1165_v33  ;;  %v805_v33 = vld [vmem:[%s1598_s5 + $0x18] sm:$0xff] }
  0xb3   : > { %733 = vmatpush1.bf16.msra.mxu0 %v1167_v34  ;;  %776 = vmatpush1.bf16.msra.mxu1 %v1168_v35 }
  0xb4   : > { %734 = vmatprep.subr.bf16.mxu0 %v1169_v36  ;;  %777 = vmatprep.subr.bf16.mxu1 %v1171_v37 }
  0xb7   : > { %735 = vmatpush1.bf16.msra.mxu0 %v1173_v38  ;;  %778 = vmatpush1.bf16.msra.mxu1 %v1174_v39 }
  0xb8   : > { %736 = vmatprep.subr.bf16.mxu0 %v1175_v40  ;;  %779 = vmatprep.subr.bf16.mxu1 %v1177_v41 }
  0xbb   : > { %737 = vmatpush1.bf16.msra.mxu0 %v1179_v42  ;;  %780 = vmatpush1.bf16.msra.mxu1 %v1180_v43 }
  0xbc   : > { %738 = vmatprep.subr.bf16.mxu0 %v1181_v44  ;;  %781 = vmatprep.subr.bf16.mxu1 %v1183_v45 }
  0xbf   : > { %739 = vmatpush1.bf16.msra.mxu0 %v1185_v48  ;;  %782 = vmatpush1.bf16.msra.mxu1 %v1186_v49 }
  0xc0   : > { %740 = vmatprep.subr.bf16.mxu0 %v1187_v51  ;;  %783 = vmatprep.subr.bf16.mxu1 %v1189_v52 }
  0xc3   : > { %741 = vmatpush1.bf16.msra.mxu0 %v1191_v53  ;;  %784 = vmatpush1.bf16.msra.mxu1 %v1192_v54 }
  0xc4   : > { %742 = vmatprep.subr.bf16.mxu0 %v1193_v55  ;;  %785 = vmatprep.subr.bf16.mxu1 %v1195_v56 }
  0xc7   : > { %743 = vmatpush1.bf16.msra.mxu0 %v1197_v57  ;;  %786 = vmatpush1.bf16.msra.mxu1 %v1198_v58 }
  0xc8   : > { %744 = vmatprep.subr.bf16.mxu0 %v1199_v59  ;;  %787 = vmatprep.subr.bf16.mxu1 %v1201_v60 }
  0xcb   : > { %745 = vmatpush1.bf16.msra.mxu0 %v1203_v61  ;;  %788 = vmatpush1.bf16.msra.mxu1 %v1204_v62 }
  0xcc   : > { %746 = vmatprep.subr.bf16.mxu0 %v1205_v63  ;;  %789 = vmatprep.subr.bf16.mxu1 %v1207_v0 }
  0xcf   : > { %747 = vmatpush1.bf16.msra.mxu0 %v1209_v1  ;;  %790 = vmatpush1.bf16.msra.mxu1 %v1210_v2 }
  0xd2   : > { %749 = vmatmul.mubr.bf16.vlgmr.msra.gmra.mrb[0].mxu0 %v308_v5  ;;  %792 = vmatmul.mubr.bf16.vlgmr.msra.gmra.mrb[0].mxu1 %v308_v5 }
 0x1a5   : > { %v750_v17 = vpop.f32.mrb[0].mxu0  ;;  %v793_v19 = vpop.f32.mrb[0].mxu1 }
 0x1a6   : > { %v751_v20 = vadd.f32 %v750_v17, %v379_v13  ;;  %v794_v21 = vadd.f32 %v793_v19, %v387_v14  ;;  %v752_v22 = vpop.f32.mrb[1].mxu0  ;;  %v795_v24 = vpop.f32.mrb[1].mxu1 }
 0x1a7   : > { %v753_v25 = vadd.f32 %v752_v22, %v383_v15  ;;  %v796_v26 = vadd.f32 %v795_v24, %v391_v16  ;;  %v754_v27 = vpop.f32.mrb[2].mxu0  ;;  %v797_v29 = vpop.f32.mrb[2].mxu1 }
 0x1a8   : > { %v806_v30 = vmul.f32 %v802_v18, %v751_v20  ;;  %v755_v31 = vadd.f32 %v754_v27, %v379_v13  ;;  %v756_v32 = vpop.f32.mrb[3].mxu0  ;;  %v799_v34 = vpop.f32.mrb[3].mxu1  ;;  %v798_v39 = vadd.f32 %v797_v29, %v387_v14 }
 0x1a9   : > { %v807_v35 = vmul.f32 %v803_v23, %v753_v25  ;;  %v757_v36 = vadd.f32 %v756_v32, %v383_v15  ;;  %v800_v42 = vadd.f32 %v799_v34, %v391_v16  ;;  %825 = sbr.rel (!%p1710_p12) target bundleno = 460 (0x1cc), region = 52 }
 0x1aa   : > { %v810_v37 = vadd.f32 %v806_v30, %v794_v21  ;;  %v808_v38 = vmul.f32 %v804_v28, %v755_v31 }
 0x1ab   : > { %v811_v40 = vadd.f32 %v807_v35, %v796_v26  ;;  %v809_v41 = vmul.f32 %v805_v33, %v757_v36 }
 0x1ac   : > { %814 = vst [vmem:[%s285_s30] sm:$0xff] %v810_v37  ;;  %v812_v43 = vadd.f32 %v808_v38, %v798_v39 }
 0x1ad   : > { %815 = vst [vmem:[%s285_s30 + $0x8] sm:$0xff] %v811_v40  ;;  %v813_v44 = vadd.f32 %v809_v41, %v800_v42 }
 0x1ae   : > { %816 = vst [vmem:[%s285_s30 + $0x10] sm:$0xff] %v812_v43 }
 0x1af   : > { %817 = vst [vmem:[%s285_s30 + $0x18] sm:$0xff] %v813_v44 }
 0x1b0   : > { %s1721_s6 = smov (!%p828_p2, %s827_s6), 2 }
 0x1b1   : > { %s1632_s25 = sshll.u32 %s1721_s6, 8 }
 0x1b2   : > { %s833_s11 = ssub.s32 512, %s1632_s25 }
 0x1b3   : > { %834 = vsyncadd %s819_s12, %s833_s11  ;;  %p1040_p3 = scmp.ne.s32.totalorder %s1632_s25, 0  ;;  %s1055_s22 = sshll.u32 %s1429_s19, 9 }
 0x1b4   : > { %s1642_s9 = scalar_lea.hbm %s1694_s4, %s1055_s22  ;;  %s840_s10 = sshll.u32 %s285_s30, 4  ;;  %s1644_s10 = int_to_ptr.vmem [resolvable:$true] %s840_s10 }
 0x1b5   : > { %s1295_s5 = scalar_lea.vmem %s1644_s10, %s1632_s25  ;;  %s1380_s29 = smov [#allocation8]  }
 0x1b6   : > { %p1296_p13 = scmp.ne.s32.totalorder %s1644_s10, %s1295_s5  ;;  %s1299_s13 = sshll.u32 %s1380_s29, 4  ;;  %s1300_s13 = int_to_ptr.vmem [resolvable:$false] %s1299_s13 }
 0x1b7   : > { %s1301_s19 = scalar_lea.vmem %s1300_s13, 1024  ;;  %p1302_p9 = scmp.lt.s32.totalorder %s1644_s10, %s1300_s13 }
 0x1b8   : > { %p1297_p7 = pnand %p1296_p13, %p1040_p3  ;;  %p1303_p1 = scmp.lt.s32.totalorder %s1301_s19, %s1295_s5 }
 0x1ba   : > { %p1298_p8 = pneg %p1297_p7  ;;  %p1304_p4 = por %p1303_p1, %p1302_p9 }
 0x1bc   : > { %p1305_p10 = pnand %p1304_p4, %p1298_p8 }
 0x1be   : > { %1308 = shalt.err (!%p1305_p10)
}
 0x1bf   : > { %s1309_s20 = scalar_lea.hbm %s1642_s9, %s1632_s25  ;;  %s1313_s30 = scalar_lea.hbm %s1694_s4, 768 }
 0x1c0   : > { %p1310_p5 = scmp.ne.s32.totalorder %s1642_s9, %s1309_s20  ;;  %p1314_p12 = scmp.lt.u32.totalorder %s1642_s9, %s1694_s4 }
 0x1c1   : > { %p1315_p2 = scmp.lt.u32.totalorder %s1313_s30, %s1309_s20  ;;  %p1317_p7 = scmp.lt.u32.totalorder %s1309_s20, %s1642_s9 }
 0x1c2   : > { %p1311_p6 = pnand %p1310_p5, %p1040_p3 }
 0x1c3   : > { %p1316_p13 = por %p1315_p2, %p1314_p12 }
 0x1c4   : > { %p1312_p11 = pneg %p1311_p6 }
 0x1c5   : > { %p1318_p8 = por %p1317_p7, %p1316_p13 }
 0x1c7   : > { %p1319_p9 = pnand %p1318_p8, %p1312_p11 }
 0x1c9   : > { %1322 = shalt.err (!%p1319_p9)
}
 0x1ca   : > { %s1381_s11 = smov 256   ;;  %s1382_s22 = smov 16  }
 0x1cb   : > { %846 = dma.vmem_to_hbm [thread:$0]  (%p1040_p3), %s1644_s10, %s1632_s25, %s1642_s9, %s819_s12, %s1381_s11, %s1381_s11, %s1382_s22  }
 0x1cc PF: > { %s855_s27 = sand.u32 1, %s1357_s15   ;;  %p1711_p1 = scmp.ne.s32.totalorder %s1701_s28, 0 }
 0x1cd   : > { %s856_s7 = scalar_lea.sflag [#allocation4], %s855_s27 }
 0x1ce   : > { %p1068_p4 = pnand %p948_p0, %p1711_p1 }
 0x1d0   : > { %1352 = dma.done.wait (!%p1068_p4), %s856_s7, 512  }
 0x1d1   : > { %1354 = vsyncadd (!%p1068_p4), %s856_s7, 4294966784  ;;  %p20_p10 = scmp.ge.s32.totalorder %s1433_s21, 4   ;;  %s1712_s15 = smov %s1361_s16 }
 0x1d2   : > { %s1713_s16 = smov %s1365_s17  ;;  %s1714_s17 = smov %s1445_s24 }
 0x1d3   : > { %s1715_s18 = smov %s1433_s21  ;;  %22 = sbr.rel (!%p20_p10) target bundleno = 7 (0x7), region = 98 }
 0x1da   :  { %861 = vsyncpa [#allocation3], 1 }
 0x1db   :  { %863 = vsyncpa [#allocation3 + $0x1], 1 }
 0x1dc   :  { %864 = vsyncpa [#allocation6], 1 }
 0x1dd   :  { %866 = vsyncpa [#allocation6 + $0x1], 1 }
 0x1de   :  { %867 = vsyncpa [#allocation4], 1 }
 0x1df   :  { %869 = vsyncpa [#allocation4 + $0x1], 1 }

</bundles_post_ra>
